<compile_context>
chip_gen: v7x
topology: tpu7x:2x2x1
jax: 0.10.0
libtpu: 0.0.40
codegen_flags: <defaults>
</compile_context>

<pallas_src>
import jax
import jax.numpy as jnp
from jax import lax
from jax.experimental import pallas as pl
from jax.experimental.pallas import tpu as pltpu


def _const_block_spec(block_shape, index_map):
    """Single-buffered BlockSpec for constant-index (weight) blocks.

    Falls back to the default (double-buffered) spec if this Pallas version
    does not accept the pipeline_mode kwarg.
    """
    try:
        return pl.BlockSpec(block_shape, index_map, pipeline_mode=pl.Buffered(1))
    except (TypeError, AttributeError):
        return pl.BlockSpec(block_shape, index_map)


# --------------------------------------------------------------------------- #
# kv projection: stride-k conv as one contiguous matmul per batch element.
# --------------------------------------------------------------------------- #
def _kv_kernel(xp_ref, w_ref, kv_ref):
    # (Lkv, k*D) @ (k*D, 2*inner) -> (Lkv, 2*inner), bf16 in / f32 acc / bf16 out
    kv_ref[...] = jnp.dot(
        xp_ref[...], w_ref[...], preferred_element_type=jnp.float32
    ).astype(kv_ref.dtype)


# --------------------------------------------------------------------------- #
# attention + output projection over one (batch, query-tile) grid point.
# --------------------------------------------------------------------------- #
def _attn_kernel(heads, dim_head, tq, lkv, inner, dim):
    def kernel(xq_ref, kv_ref, wq_ref, wo_ref, bo_ref, o_ref, q_scr):
        # q projection for this tile; softmax scale is pre-folded into wq.
        q = jnp.dot(xq_ref[...], wq_ref[...],
                    preferred_element_type=jnp.float32)          # (tq, inner) f32
        q_scr[...] = q.astype(jnp.bfloat16)                      # scratch, ref-sliced below

        y = jnp.zeros((tq, dim), jnp.float32)
        for h in range(heads):                                   # heads is small & static
            lo, hi = h * dim_head, (h + 1) * dim_head
            qh = q_scr[:, lo:hi]                                 # (tq, dh)  bf16 (ref load)
            kh = kv_ref[:, lo:hi]                                # (lkv, dh) bf16
            vh = kv_ref[:, inner + lo:inner + hi]                # (lkv, dh) bf16

            # contract dim_head on both operands (no explicit transpose)
            dots = lax.dot_general(qh, kh, (((1,), (1,)), ((), ())),
                                   preferred_element_type=jnp.float32)   # (tq, lkv)
            dots = dots - jnp.max(dots, axis=-1, keepdims=True)
            e = jnp.exp(dots)                                    # f32 softmax math
            attn = e * pl.reciprocal(jnp.sum(e, axis=-1, keepdims=True),
                                     approx=True)                # EUP slot
            out_h = jnp.dot(attn.astype(jnp.bfloat16), vh,
                            preferred_element_type=jnp.float32)  # (tq, dh)
            # fold the 1x1 output conv in per head -> no lane-axis concat
            y = y + jnp.dot(out_h.astype(jnp.bfloat16), wo_ref[lo:hi, :],
                            preferred_element_type=jnp.float32)  # (tq, dim)

        # bias, then XLU transpose so the store is a lane-dense NCL (dim, tq) tile
        o_ref[...] = jnp.transpose(y + bo_ref[...], (1, 0))

    return kernel


def global_attention(x_ncl, wq, wkv, wo, bo, *, heads, dim_head, k, tq=256):
    """x_ncl: (B, dim, L) like PyTorch. Returns (B, dim, L) float32."""
    B, D, L = x_ncl.shape
    inner = heads * dim_head
    assert L % k == 0, "sequence length must be divisible by k (as in PyTorch)"
    assert tq % 8 == 0, "tq must be a multiple of 8"
    Lkv = L // k
    scale = float(dim_head) ** -0.5

    # query tile: never larger than (L rounded up to 8); pad L up to a multiple.
    tq_eff = min(tq, ((L + 7) // 8) * 8)
    L_pad = ((L + tq_eff - 1) // tq_eff) * tq_eff
    nq = L_pad // tq_eff

    # ---- glue: layout + weight flattening (plain JAX, outside the kernels) ---
    x_bld = jnp.transpose(x_ncl, (0, 2, 1)).astype(jnp.bfloat16)        # (B, L, D) bf16
    # stride-k conv patches: (B, Lkv, k*D), flattened (t, c) to match wkv_flat
    x_patches = x_bld.reshape(B, Lkv, k * D)
    x_q = x_bld if L_pad == L else jnp.pad(x_bld, ((0, 0), (0, L_pad - L), (0, 0)))

    wq_m = (jnp.transpose(wq[:, :, 0], (1, 0)) * scale).astype(jnp.bfloat16)  # (D, inner)
    wkv_flat = jnp.transpose(wkv, (2, 1, 0)).reshape(k * D, 2 * inner) \
                  .astype(jnp.bfloat16)                                       # (k*D, 2*inner)
    wo_m = jnp.transpose(wo[:, :, 0], (1, 0)).astype(jnp.bfloat16)            # (inner, D)
    bo_m = bo.reshape(1, D).astype(jnp.float32)                               # (1, D)

    # ---- kv projection kernel: grid over batch, one matmul per element ------
    # TODO(synk): tile Lkv for very long sequences (full (Lkv, k*D) block here).
    kv = pl.pallas_call(
        _kv_kernel,
        out_shape=jax.ShapeDtypeStruct((B, Lkv, 2 * inner), jnp.bfloat16),
        grid_spec=pltpu.PrefetchScalarGridSpec(
            num_scalar_prefetch=0,
            grid=(B,),
            in_specs=[
                pl.BlockSpec((None, Lkv, k * D), lambda b: (b, 0, 0)),
                _const_block_spec((k * D, 2 * inner), lambda b: (0, 0)),
            ],
            out_specs=pl.BlockSpec((None, Lkv, 2 * inner), lambda b: (b, 0, 0)),
        ),
        compiler_params=pltpu.CompilerParams(dimension_semantics=("parallel",)),
        cost_estimate=pl.CostEstimate(
            flops=int(2 * B * Lkv * (k * D) * (2 * inner)),
            transcendentals=0,
            bytes_accessed=int(B * Lkv * k * D * 2 + k * D * 2 * inner * 2
                               + B * Lkv * 2 * inner * 2),
        ),
    )(x_patches, wkv_flat)

    # ---- attention kernel ----------------------------------------------------
    kernel = _attn_kernel(heads, dim_head, tq_eff, Lkv, inner, D)

    # VMEM footprint estimate; only request an override when the default scoped
    # limit will not fit, and cap at 48 MiB (headroom on v7x's 64 MiB VMEM).
    vmem_est = (2 * tq_eff * D * 2                 # xq, double-buffered bf16
                + 2 * Lkv * 2 * inner * 2          # kv, double-buffered bf16
                + (D * inner + inner * D) * 2 + D * 4   # weights (single-buffered) + bias
                + 2 * D * tq_eff * 4               # output, double-buffered f32
                + tq_eff * inner * 2)              # q scratch
    vmem_limit = None if vmem_est <= 24 * 1024 * 1024 \
        else min(2 * vmem_est, 48 * 1024 * 1024)

    flops = int(B * (2 * L_pad * D * inner            # q projection
                     + 4 * L_pad * Lkv * inner        # QK^T + attn @ V
                     + 2 * L_pad * inner * D))        # output projection
    bytes_accessed = int(B * L_pad * D * 2 + B * Lkv * 2 * inner * 2
                         + (D * inner + inner * D) * 2 + D * 4
                         + B * D * L_pad * 4)

    y_ncl = pl.pallas_call(
        kernel,
        out_shape=jax.ShapeDtypeStruct((B, D, L_pad), jnp.float32),
        grid_spec=pltpu.PrefetchScalarGridSpec(
            num_scalar_prefetch=0,
            grid=(B, nq),
            in_specs=[
                # per-tile q-path block: O(tq*D) footprint, many small DMAs
                pl.BlockSpec((None, tq_eff, D), lambda b, q: (b, q, 0)),
                # kv block per batch; index ignores the q-tile axis -> DMA'd once per batch
                pl.BlockSpec((None, Lkv, 2 * inner), lambda b, q: (b, 0, 0)),
                _const_block_spec((D, inner), lambda b, q: (0, 0)),
                _const_block_spec((inner, D), lambda b, q: (0, 0)),
                _const_block_spec((1, D), lambda b, q: (0, 0)),
            ],
            # output written directly in NCL layout (lane-dense (D, tq) store)
            out_specs=pl.BlockSpec((None, D, tq_eff), lambda b, q: (b, 0, q)),
            scratch_shapes=[pltpu.VMEM((tq_eff, inner), jnp.bfloat16)],
        ),
        compiler_params=pltpu.CompilerParams(
            # no carried state -> both axes parallel (v7x: 2 TensorCores)
            dimension_semantics=("parallel", "parallel"),
            vmem_limit_bytes=vmem_limit,
        ),
        cost_estimate=pl.CostEstimate(
            flops=flops,
            transcendentals=int(B * heads * L_pad * Lkv),
            bytes_accessed=bytes_accessed,
        ),
    )(x_q, kv, wq_m, wo_m, bo_m)

    return y_ncl[:, :, :L]                                        # drop padded rows


def reference(x_ncl, wq, wkv, wo, bo, *, heads, dim_head, k):
    """Pure-JAX f32 reference mirroring the PyTorch forward (dropout=0)."""
    B, D, L = x_ncl.shape
    inner = heads * dim_head
    scale = float(dim_head) ** -0.5
    q = jnp.einsum('bcl,oc->bol', x_ncl, wq[:, :, 0])
    xp = x_ncl.reshape(B, D, L // k, k)
    kv = jnp.einsum('bcjt,oct->boj', xp, wkv)
    kk, vv = kv[:, :inner], kv[:, inner:]

    def split_heads(t):
        b, _, l = t.shape
        return t.reshape(b, heads, dim_head, l).transpose(0, 1, 3, 2).reshape(
            b * heads, l, dim_head)

    qh, kh, vh = map(split_heads, (q, kk, vv))
    dots = jnp.einsum('bid,bjd->bij', qh, kh) * scale
    attn = jax.nn.softmax(dots, axis=-1)
    out = jnp.einsum('bij,bjd->bid', attn, vh)
    out = out.reshape(B, heads, L, dim_head).transpose(0, 1, 3, 2).reshape(B, inner, L)
    return jnp.einsum('bcl,oc->bol', out, wo[:, :, 0]) + bo[None, :, None]


if __name__ == "__main__":
    # Two small configs: one with L % tq == 0 (nq=2), one exercising L padding
    # (192 -> 256) and a non-128 kv length (Lkv = 48). dim = inner = 128 keeps
    # every matmul and store lane-dense.
    configs = [
        # (B, dim, L, heads, dim_head, k, tq)
        (2, 128, 512, 4, 32, 4, 256),
        (1, 128, 192, 4, 32, 4, 128),
    ]

    key = jax.random.PRNGKey(0)
    for (B, DIM, L, HEADS, DIM_HEAD, K, TQ) in configs:
        INNER = HEADS * DIM_HEAD
        key, kx, kq, kkv, ko, kb = jax.random.split(key, 6)

        x = jax.random.normal(kx, (B, DIM, L), dtype=jnp.float32)
        # synthetic parameters (shapes per nn.Conv1d in the module's __init__)
        wq = 0.1 * jax.random.normal(kq, (INNER, DIM, 1), dtype=jnp.float32)        # to_q
        wkv = 0.1 * jax.random.normal(kkv, (2 * INNER, DIM, K), dtype=jnp.float32)  # to_kv
        wo = 0.1 * jax.random.normal(ko, (DIM, INNER, 1), dtype=jnp.float32)        # to_out conv
        bo = 0.1 * jax.random.normal(kb, (DIM,), dtype=jnp.float32)                 # to_out bias

        y = global_attention(x, wq, wkv, wo, bo,
                             heads=HEADS, dim_head=DIM_HEAD, k=K, tq=TQ)
        y = jax.block_until_ready(y)

        y_ref = reference(x, wq, wkv, wo, bo, heads=HEADS, dim_head=DIM_HEAD, k=K)
        assert y.shape == (B, DIM, L)
        # bf16 MXU operands / f32 accumulation & softmax -> bf16-level tolerance,
        # plus a tight mean-error check to catch structural bugs.
        assert jnp.allclose(y, y_ref, atol=1e-1, rtol=1e-1), "mismatch vs reference"
        assert float(jnp.mean(jnp.abs(y - y_ref))) < 2.5e-2, "mean error too large"

    print("KERNEL_OK")
</pallas_src>

<mosaic_0001>
module attributes {stable_mosaic.version = 11 : i64} {
  func.func @_kv_kernel(%arg0: i32, %arg1: memref<1x128x512xbf16, #tpu.memory_space<vmem>>, %arg2: memref<512x256xbf16, #tpu.memory_space<vmem>>, %arg3: memref<1x128x256xbf16, #tpu.memory_space<vmem>>) attributes {dimension_semantics = [#tpu.dimension_semantics<parallel>], iteration_bounds = array<i64: 2>, scalar_prefetch = 0 : i64, scratch_operands = 0 : i64, tpu.core_type = #tpu.core_type<tc>, window_params = [{transform_indices = @transform_0, window_bounds = array<i64: 1, 128, 512>}, {pipeline_mode = #tpu.pipeline_mode<synchronous>, transform_indices = @transform_1, window_bounds = array<i64: 512, 256>}, {transform_indices = @transform_2, window_bounds = array<i64: 1, 128, 256>}]} {
    %c0 = arith.constant 0 : index
    %c0_0 = arith.constant 0 : index
    %c0_1 = arith.constant 0 : index
    %0 = vector.load %arg1[%c0, %c0_0, %c0_1] : memref<1x128x512xbf16, #tpu.memory_space<vmem>>, vector<1x128x512xbf16>
    %1 = vector.shape_cast %0 : vector<1x128x512xbf16> to vector<128x512xbf16>
    %c0_2 = arith.constant 0 : index
    %c0_3 = arith.constant 0 : index
    %2 = vector.load %arg2[%c0_2, %c0_3] : memref<512x256xbf16, #tpu.memory_space<vmem>>, vector<512x256xbf16>
    %cst = arith.constant dense<0.000000e+00> : vector<128x256xf32>
    %3 = tpu.matmul %1, %2, %cst {dimension_numbers = #tpu.dot_dimension_numbers<[1], [0], [0], [1], [0, 0, 1, 1], [], []>} : vector<128x512xbf16>, vector<512x256xbf16>, vector<128x256xf32> -> vector<128x256xf32>
    %4 = arith.truncf %3 : vector<128x256xf32> to vector<128x256xbf16>
    %c0_4 = arith.constant 0 : index
    %c0_5 = arith.constant 0 : index
    %c0_6 = arith.constant 0 : index
    %5 = vector.load %arg3[%c0_4, %c0_5, %c0_6] : memref<1x128x256xbf16, #tpu.memory_space<vmem>>, vector<1x128x256xbf16>
    %6 = vector.shape_cast %5 : vector<1x128x256xbf16> to vector<128x256xbf16>
    %7 = vector.shape_cast %4 : vector<128x256xbf16> to vector<1x128x256xbf16>
    tpu.vector_store %arg3[%c0_4, %c0_5, %c0_6], %7 {strides = array<i32>} : memref<1x128x256xbf16, #tpu.memory_space<vmem>>, vector<1x128x256xbf16>,
    return
  }
  func.func @transform_0(%arg0: i32) -> (i32, i32, i32) {
    %c0_i32 = arith.constant 0 : i32
    %c0_i32_0 = arith.constant 0 : i32
    %c0_i32_1 = arith.constant 0 : i32
    return %arg0, %c0_i32, %c0_i32_0 : i32, i32, i32
  }
  func.func @transform_1(%arg0: i32) -> (i32, i32) {
    %c0_i32 = arith.constant 0 : i32
    %c0_i32_0 = arith.constant 0 : i32
    %c0_i32_1 = arith.constant 0 : i32
    return %c0_i32, %c0_i32_0 : i32, i32
  }
  func.func @transform_2(%arg0: i32) -> (i32, i32, i32) {
    %c0_i32 = arith.constant 0 : i32
    %c0_i32_0 = arith.constant 0 : i32
    %c0_i32_1 = arith.constant 0 : i32
    return %arg0, %c0_i32, %c0_i32_0 : i32, i32, i32
  }
}

</mosaic_0001>

<bundles_post_ra>
// kernel: tpu_custom_call.1
= control target key start
LH: loop header
LB: loop body
LE: loop exit
PB: predicated region body
PF: predicated region fallthrough
CT: control target
= control target key end

     0   :  { %7 = vsyncpa [#allocation3], 0  ;;  %s1982_s0 = inlined_call_operand.hbm [shape: bf16[2,128,512], index: 0, kind: input, shape index: {}]   ;;  %s1983_s1 = inlined_call_operand.hbm [shape: bf16[512,256], index: 1, kind: input, shape index: {}]   ;;  %s1984_s2 = inlined_call_operand.hbm [shape: bf16[2,128,256], index: 2, kind: output, shape index: {}]  }
   0x1   :  { %9 = vsyncpa [#allocation3 + $0x1], 0 }
   0x2   :  { %10 = vsyncpa [#allocation6], 0 }
   0x3   :  { %11 = vsyncpa [#allocation4], 0 }
   0x4   :  { %13 = vsyncpa [#allocation4 + $0x1], 0  ;;  %s1727_s9 = smov 0   ;;  %s1729_s10 = smov 0  }
   0x5   :  { %s1731_s11 = smov 0   ;;  %s1733_s12 = smov 0  }
   0x6 LB: > { %s1748_s13 = sadd.s32 4294967295, %s1701_s12   ;;  %s1188_s14 = sadd.s32 4294967294, %s1701_s12   ;;  %s1701_s12 = sphi %s1733_s12, %s2004_s12   ;;  %s1697_s11 = sphi %s1731_s11, %s2003_s11   ;;  %s1693_s10 = sphi %s1729_s10, %s2002_s10   ;;  %s1689_s9 = sphi %s1727_s9, %s2001_s9  }
   0x7   : > { %p39_p0 = scmp.ne.s32.totalorder %s1693_s10, %s1689_s9  ;;  %p1985_p1 = scmp.eq.s32.totalorder %s1748_s13, 0 }
   0x8   : > { %p90_p3 = scmp.eq.s32.totalorder %s1188_s14, 1  ;;  %p1189_p5 = scmp.ge.s32.totalorder %s1701_s12, 1 }
   0x9   : > { %p1757_p4 = por %p1985_p1, %p39_p0  ;;  %p97_p7 = scmp.lt.s32.totalorder %s1701_s12, 3 }
   0xa   : > { %p1762_p6 = por %p90_p3, %p39_p0  ;;  %s1703_s18 = smov [#allocation5]  }
   0xb   : > { %s1988_s15 = scalar_select %p1757_p4, 1, 0 }
   0xc   : > { %s1989_s16 = scalar_select %p1762_p6, 1, 0 }
   0xd   : > { %p1767_p8 = pnand %p1189_p5, %p97_p7  ;;  %s109_s19 = sshll.u32 %s1703_s18, 4  ;;  %s1771_s19 = int_to_ptr.vmem [resolvable:$true] %s109_s19 }
   0xe   : > { %s1783_s21 = sadd.s32 1, %s1701_s12   ;;  %s26_s22 = sadd.s32 1, %s1697_s11 }
   0xf   : > { %s1990_s17 = scalar_select %p1767_p8, 1, 0 }
  0x10   : > { %p1374_p9 = pneg %p1767_p8  ;;  %s23_s23 = ssub.s32 %s1701_s12, %s1783_s21 }
  0x11   : > { %s1573_s26 = scalar_lea.hbm %s1983_s1, 8192 }
  0x12   : > { %p1778_p11 = pnand %p1374_p9, %p1985_p1  ;;  %p1574_p12 = scmp.ne.s32.totalorder %s1983_s1, %s1573_s26 }
  0x13   : > { %p1580_p5 = scmp.lt.u32.totalorder %s1573_s26, %s1983_s1 }
  0x14   : > { %p1575_p13 = pneg %p1778_p11 }
  0x16   : > { %p1576_p0 = pnand %p1575_p13, %p1574_p12 }
  0x18   : > { %p1577_p3 = pneg %p1576_p0 }
  0x1a   : > { %p1582_p7 = pnand %p1580_p5, %p1577_p3 }
  0x1c   : > { %1585 = shalt.err (!%p1582_p7)
}
  0x1d   : > { %s1586_s3 = scalar_lea.vmem %s1771_s19, 8192  ;;  %p1594_p2 = scmp.lt.s32.totalorder %s1771_s19, %s1771_s19 }
  0x1e   : > { %p1587_p9 = scmp.ne.s32.totalorder %s1771_s19, %s1586_s3  ;;  %p1595_p6 = scmp.lt.s32.totalorder %s1586_s3, %s1586_s3 }
  0x20   : > { %p1589_p10 = pnand %p1587_p9, %p1575_p13  ;;  %p1596_p4 = por %p1595_p6, %p1594_p2 }
  0x22   : > { %p1590_p1 = pneg %p1589_p10 }
  0x24   : > { %p1597_p8 = pnand %p1596_p4, %p1590_p1 }
  0x26   : > { %1600 = shalt.err (!%p1597_p8)
}
  0x27   : > { %s1704_s4 = smov 128   ;;  %s1705_s5 = smov 8  }
  0x28   : > { %1377 = dma.hbm_to_vmem [thread:$0]  (!%p1778_p11), %s1983_s1, 8192, %s1771_s19, [#allocation6], %s1704_s4, %s1704_s4, %s1705_s5  }
  0x29   : > { %p24_p2 = scmp.eq.s32.totalorder %s23_s23, 0  ;;  %p33_p1 = scmp.ne.s32.totalorder %s1697_s11, %s1693_s10 }
  0x2a   : > { %p34_p4 = scmp.eq.s32.totalorder %s1701_s12, 0  ;;  %p1387_p6 = scmp.lt.s32.totalorder %s1701_s12, 2 }
  0x2b   : > { %s1814_s8 = scalar_select %p24_p2, %s1697_s11, %s26_s22  }
  0x2c   : > { %p35_p8 = por %p34_p4, %p33_p1  ;;  %p1992_p10 = scmp.eq.s32.totalorder %s1748_s13, 1 }
  0x2d   : > { %s123_s18 = sand.u32 1, %s1697_s11   ;;  %s1316_s24 = sshll.u32 %s1701_s12, 12 }
  0x2e   : > { %p1818_p12 = por %p1992_p10, %p33_p1  ;;  %s1192_s25 = sshll.u32 %s123_s18, 8 }
  0x2f   : > { %s1827_s27 = scalar_lea.hbm %s1982_s0, %s1316_s24  ;;  %s127_s19 = scalar_lea.vmem [#allocation2], %s1192_s25 }
  0x30   : > { %s134_s22 = sshll.u32 %s127_s19, 4  ;;  %p1829_p11 = pnand %p1387_p6, %p35_p8  ;;  %s1833_s22 = int_to_ptr.vmem [resolvable:$true] %s134_s22 }
  0x31   : > { %s1835_s28 = scalar_lea.sflag [#allocation3], %s123_s18  ;;  %s1601_s29 = scalar_lea.hbm %s1827_s27, 4096 }
  0x32   : > { %p1602_p13 = scmp.ne.s32.totalorder %s1827_s27, %s1601_s29  ;;  %p1603_p0 = pneg %p1829_p11 }
  0x33   : > { %s1606_s4 = scalar_lea.hbm %s1982_s0, 8192  ;;  %p1607_p7 = scmp.lt.u32.totalorder %s1827_s27, %s1982_s0 }
  0x34   : > { %p1604_p3 = pnand %p1603_p0, %p1602_p13  ;;  %p1608_p9 = scmp.lt.u32.totalorder %s1606_s4, %s1601_s29 }
  0x35   : > { %p1610_p1 = scmp.lt.u32.totalorder %s1601_s29, %s1827_s27 }
  0x36   : > { %p1605_p5 = pneg %p1604_p3  ;;  %p1609_p2 = por %p1608_p9, %p1607_p7 }
  0x38   : > { %p1611_p4 = por %p1610_p1, %p1609_p2 }
  0x3a   : > { %p1612_p6 = pnand %p1611_p4, %p1605_p5 }
  0x3c   : > { %1615 = shalt.err (!%p1612_p6)
}
  0x3d   : > { %s1616_s7 = scalar_lea.vmem %s1833_s22, 4096  ;;  %s1706_s18 = smov [#allocation2]  }
  0x3e   : > { %p1617_p8 = scmp.ne.s32.totalorder %s1833_s22, %s1616_s7  ;;  %s1621_s24 = sshll.u32 %s1706_s18, 4  ;;  %s1622_s24 = int_to_ptr.vmem [resolvable:$false] %s1621_s24 }
  0x3f   : > { %s1623_s25 = scalar_lea.vmem %s1622_s24, 8192  ;;  %p1624_p3 = scmp.lt.s32.totalorder %s1833_s22, %s1622_s24 }
  0x40   : > { %p1619_p10 = pnand %p1617_p8, %p1603_p0  ;;  %p1625_p7 = scmp.lt.s32.totalorder %s1623_s25, %s1616_s7 }
  0x42   : > { %p1620_p13 = pneg %p1619_p10  ;;  %p1626_p9 = por %p1625_p7, %p1624_p3 }
  0x44   : > { %p1627_p2 = pnand %p1626_p9, %p1620_p13 }
  0x46   : > { %1630 = shalt.err (!%p1627_p2)
}
  0x47   : > { %s1707_s20 = smov 256   ;;  %s1708_s26 = smov 16  }
  0x48   : > { %1381 = dma.hbm_to_vmem [thread:$0]  (!%p1829_p11), %s1827_s27, 4096, %s1833_s22, %s1835_s28, %s1707_s20, %s1707_s20, %s1708_s26  }
  0x49   : > { %p1995_p0 = scmp.ne.s32.totalorder %s1990_s17, 0 }
  0x4a   : > { %s1866_s19 = sand.u32 (!%p1995_p0), 1, %s1693_s10   ;;  %p1996_p5 = scmp.ne.s32.totalorder (!%p1995_p0), %s1988_s15, 0 }
  0x4b   : > { %146 = sbr.rel (%p1995_p0) target bundleno = 442 (0x1ba), region = 28  ;;  %s1196_s29 = sshll.u32 (!%p1995_p0), %s1866_s19, 8 }
  0x4c   : > { %s149_s30 = scalar_lea.sflag (!%p1995_p0), [#allocation3], %s1866_s19  ;;  %s1870_s3 = scalar_lea.vmem (!%p1995_p0), [#allocation2], %s1196_s29 }
  0x52   : > { %1676 = dma.done.wait (%p1996_p5), %s149_s30, 4096  }
  0x53   : > { %1678 = vsyncadd (%p1996_p5), %s149_s30, 4294963200  ;;  %p1997_p11 = scmp.eq.s32.totalorder %s1748_s13, 0 }
  0x55   : > { %1680 = dma.done.wait (%p1997_p11), [#allocation6], 8192   ;;  %p1998_p1 = pmov %p1997_p11 }
  0x56   : > { %v1429_v0 = vld [vmem:[#allocation5 + $0x4] ss:$8 sps:$4 sm:$0xff]   ;;  %v1433_v2 = vld [vmem:[#allocation5] ss:$8 sps:$4 sm:$0xff]   ;;  %v1435_v4 = vld [vmem:[#allocation5 + $0x14] ss:$8 sps:$4 sm:$0xff]  }
  0x57   : > { %1682 = vsyncadd (%p1998_p1), [#allocation6], 4294959104  ;;  %v1431_v1 = vld [vmem:[#allocation5 + $0x104] ss:$8 sps:$4 sm:$0xff]   ;;  %753 = vmatprep.subr.bf16.mxu1 %v1429_v0  ;;  %v1434_v3 = vld [vmem:[#allocation5 + $0x100] ss:$8 sps:$4 sm:$0xff]  }
  0x58   : > { %866 = vmatprep.subr.bf16.mxu0 %v1431_v1  ;;  %754 = vmatpush1.bf16.msra.mxu1 %v1433_v2  ;;  %v1437_v5 = vld [vmem:[#allocation5 + $0x114] ss:$8 sps:$4 sm:$0xff]   ;;  %v1439_v6 = vld [vmem:[#allocation5 + $0x10] ss:$8 sps:$4 sm:$0xff]   ;;  %v1441_v8 = vld [vmem:[#allocation5 + $0x24] ss:$8 sps:$4 sm:$0xff]  }
  0x59   : > { %867 = vmatpush1.bf16.msra.mxu0 %v1434_v3  ;;  %755 = vmatprep.subr.bf16.mxu1 %v1435_v4  ;;  %v1440_v7 = vld [vmem:[#allocation5 + $0x110] ss:$8 sps:$4 sm:$0xff]   ;;  %v1443_v9 = vld [vmem:[#allocation5 + $0x124] ss:$8 sps:$4 sm:$0xff]   ;;  %v1445_v10 = vld [vmem:[#allocation5 + $0x20] ss:$8 sps:$4 sm:$0xff]  }
  0x5a   : > { %868 = vmatprep.subr.bf16.mxu0 %v1437_v5  ;;  %v1446_v11 = vld [vmem:[#allocation5 + $0x120] ss:$8 sps:$4 sm:$0xff]   ;;  %v1447_v12 = vld [vmem:[#allocation5 + $0x34] ss:$8 sps:$4 sm:$0xff]   ;;  %v1451_v14 = vld [vmem:[#allocation5 + $0x30] ss:$8 sps:$4 sm:$0xff]  }
  0x5b   : > { %v1449_v13 = vld [vmem:[#allocation5 + $0x134] ss:$8 sps:$4 sm:$0xff]   ;;  %v1452_v15 = vld [vmem:[#allocation5 + $0x130] ss:$8 sps:$4 sm:$0xff]   ;;  %v1453_v16 = vld [vmem:[#allocation5 + $0x44] ss:$8 sps:$4 sm:$0xff]  }
  0x5c   : > { %756 = vmatpush1.bf16.msra.mxu1 %v1439_v6  ;;  %v1455_v17 = vld [vmem:[#allocation5 + $0x144] ss:$8 sps:$4 sm:$0xff]   ;;  %v1457_v18 = vld [vmem:[#allocation5 + $0x40] ss:$8 sps:$4 sm:$0xff]   ;;  %v1459_v20 = vld [vmem:[#allocation5 + $0x54] ss:$8 sps:$4 sm:$0xff]  }
  0x5d   : > { %869 = vmatpush1.bf16.msra.mxu0 %v1440_v7  ;;  %757 = vmatprep.subr.bf16.mxu1 %v1441_v8  ;;  %v1458_v19 = vld [vmem:[#allocation5 + $0x140] ss:$8 sps:$4 sm:$0xff]   ;;  %v1461_v21 = vld [vmem:[#allocation5 + $0x154] ss:$8 sps:$4 sm:$0xff]   ;;  %v1463_v22 = vld [vmem:[#allocation5 + $0x50] ss:$8 sps:$4 sm:$0xff]  }
  0x5e   : > { %870 = vmatprep.subr.bf16.mxu0 %v1443_v9  ;;  %v1464_v23 = vld [vmem:[#allocation5 + $0x150] ss:$8 sps:$4 sm:$0xff]   ;;  %v1465_v24 = vld [vmem:[#allocation5 + $0x64] ss:$8 sps:$4 sm:$0xff]   ;;  %v1469_v26 = vld [vmem:[#allocation5 + $0x60] ss:$8 sps:$4 sm:$0xff]  }
  0x5f   : > { %v1467_v25 = vld [vmem:[#allocation5 + $0x164] ss:$8 sps:$4 sm:$0xff]   ;;  %v1470_v27 = vld [vmem:[#allocation5 + $0x160] ss:$8 sps:$4 sm:$0xff]   ;;  %v1471_v28 = vld [vmem:[#allocation5 + $0x74] ss:$8 sps:$4 sm:$0xff]  }
  0x60   : > { %758 = vmatpush1.bf16.msra.mxu1 %v1445_v10  ;;  %v1473_v29 = vld [vmem:[#allocation5 + $0x174] ss:$8 sps:$4 sm:$0xff]   ;;  %v1475_v30 = vld [vmem:[#allocation5 + $0x70] ss:$8 sps:$4 sm:$0xff]   ;;  %v1477_v32 = vld [vmem:[#allocation5 + $0x84] ss:$8 sps:$4 sm:$0xff]  }
  0x61   : > { %871 = vmatpush1.bf16.msra.mxu0 %v1446_v11  ;;  %759 = vmatprep.subr.bf16.mxu1 %v1447_v12  ;;  %v1476_v31 = vld [vmem:[#allocation5 + $0x170] ss:$8 sps:$4 sm:$0xff]   ;;  %v1479_v33 = vld [vmem:[#allocation5 + $0x184] ss:$8 sps:$4 sm:$0xff]   ;;  %v1481_v34 = vld [vmem:[#allocation5 + $0x80] ss:$8 sps:$4 sm:$0xff]  }
  0x62   : > { %872 = vmatprep.subr.bf16.mxu0 %v1449_v13  ;;  %v1482_v35 = vld [vmem:[#allocation5 + $0x180] ss:$8 sps:$4 sm:$0xff]   ;;  %v1483_v36 = vld [vmem:[#allocation5 + $0x94] ss:$8 sps:$4 sm:$0xff]   ;;  %v1487_v38 = vld [vmem:[#allocation5 + $0x90] ss:$8 sps:$4 sm:$0xff]  }
  0x63   : > { %v1485_v37 = vld [vmem:[#allocation5 + $0x194] ss:$8 sps:$4 sm:$0xff]   ;;  %v1488_v39 = vld [vmem:[#allocation5 + $0x190] ss:$8 sps:$4 sm:$0xff]   ;;  %v1489_v40 = vld [vmem:[#allocation5 + $0xa4] ss:$8 sps:$4 sm:$0xff]  }
  0x64   : > { %760 = vmatpush1.bf16.msra.mxu1 %v1451_v14  ;;  %v1491_v41 = vld [vmem:[#allocation5 + $0x1a4] ss:$8 sps:$4 sm:$0xff]   ;;  %v1493_v42 = vld [vmem:[#allocation5 + $0xa0] ss:$8 sps:$4 sm:$0xff]   ;;  %v1495_v44 = vld [vmem:[#allocation5 + $0xb4] ss:$8 sps:$4 sm:$0xff]  }
  0x65   : > { %873 = vmatpush1.bf16.msra.mxu0 %v1452_v15  ;;  %761 = vmatprep.subr.bf16.mxu1 %v1453_v16  ;;  %v1494_v43 = vld [vmem:[#allocation5 + $0x1a0] ss:$8 sps:$4 sm:$0xff]   ;;  %v1497_v45 = vld [vmem:[#allocation5 + $0x1b4] ss:$8 sps:$4 sm:$0xff]   ;;  %v1499_v46 = vld [vmem:[#allocation5 + $0xb0] ss:$8 sps:$4 sm:$0xff]  }
  0x66   : > { %874 = vmatprep.subr.bf16.mxu0 %v1455_v17  ;;  %v1500_v47 = vld [vmem:[#allocation5 + $0x1b0] ss:$8 sps:$4 sm:$0xff]   ;;  %v1501_v48 = vld [vmem:[#allocation5 + $0xc4] ss:$8 sps:$4 sm:$0xff]   ;;  %v1505_v52 = vld [vmem:[#allocation5 + $0xc0] ss:$8 sps:$4 sm:$0xff]  }
  0x67   : > { %v1527_v49 = vld [vmem:[%s1870_s3 + $0x4] ss:$16 sps:$4 sm:$0xff]   ;;  %v1530_v51 = vld [vmem:[%s1870_s3 + $0xc] ss:$16 sps:$4 sm:$0xff]   ;;  %v1506_v53 = vld [vmem:[#allocation5 + $0x1c0] ss:$8 sps:$4 sm:$0xff]  }
  0x68   : > { %762 = vmatpush1.bf16.msra.mxu1 %v1457_v18  ;;  %v1503_v50 = vld [vmem:[#allocation5 + $0x1c4] ss:$8 sps:$4 sm:$0xff]   ;;  %785 = vmatprep.mubr.bf16.mxu1 %v1527_v49  ;;  %v1507_v54 = vld [vmem:[#allocation5 + $0xd4] ss:$8 sps:$4 sm:$0xff]   ;;  %v1511_v56 = vld [vmem:[#allocation5 + $0xd0] ss:$8 sps:$4 sm:$0xff]  }
  0x69   : > { %875 = vmatpush1.bf16.msra.mxu0 %v1458_v19  ;;  %763 = vmatprep.subr.bf16.mxu1 %v1459_v20  ;;  %v1509_v55 = vld [vmem:[#allocation5 + $0x1d4] ss:$8 sps:$4 sm:$0xff]   ;;  %v1512_v57 = vld [vmem:[#allocation5 + $0x1d0] ss:$8 sps:$4 sm:$0xff]   ;;  %v1513_v58 = vld [vmem:[#allocation5 + $0xe4] ss:$8 sps:$4 sm:$0xff]  }
  0x6a   : > { %876 = vmatprep.subr.bf16.mxu0 %v1461_v21  ;;  %898 = vmatprep.mubr.bf16.mxu0 %v1530_v51  ;;  %v1515_v59 = vld [vmem:[#allocation5 + $0x1e4] ss:$8 sps:$4 sm:$0xff]   ;;  %v1517_v60 = vld [vmem:[#allocation5 + $0xe0] ss:$8 sps:$4 sm:$0xff]   ;;  %v1519_v62 = vld [vmem:[#allocation5 + $0xf4] ss:$8 sps:$4 sm:$0xff]  }
  0x6b   : > { %v1518_v61 = vld [vmem:[#allocation5 + $0x1e0] ss:$8 sps:$4 sm:$0xff]   ;;  %v1521_v63 = vld [vmem:[#allocation5 + $0x1f4] ss:$8 sps:$4 sm:$0xff]   ;;  %v1523_v0 = vld [vmem:[#allocation5 + $0xf0] ss:$8 sps:$4 sm:$0xff]  }
  0x6c   : > { %764 = vmatpush1.bf16.msra.mxu1 %v1463_v22  ;;  %v1524_v1 = vld [vmem:[#allocation5 + $0x1f0] ss:$8 sps:$4 sm:$0xff]   ;;  %v1531_v4 = vld [vmem:[%s1870_s3 + $0x24] ss:$16 sps:$4 sm:$0xff]   ;;  %v1533_v5 = vld [vmem:[%s1870_s3 + $0x2c] ss:$16 sps:$4 sm:$0xff]  }
  0x6d   : > { %877 = vmatpush1.bf16.msra.mxu0 %v1464_v23  ;;  %765 = vmatprep.subr.bf16.mxu1 %v1465_v24  ;;  %v1525_v2 = vld [vmem:[%s1870_s3] ss:$16 sps:$4 sm:$0xff]   ;;  %v1528_v3 = vld [vmem:[%s1870_s3 + $0x8] ss:$16 sps:$4 sm:$0xff]   ;;  %v1537_v8 = vld [vmem:[%s1870_s3 + $0x44] ss:$16 sps:$4 sm:$0xff]  }
  0x6e   : > { %878 = vmatprep.subr.bf16.mxu0 %v1467_v25  ;;  %v1535_v6 = vld [vmem:[%s1870_s3 + $0x20] ss:$16 sps:$4 sm:$0xff]   ;;  %v1536_v7 = vld [vmem:[%s1870_s3 + $0x28] ss:$16 sps:$4 sm:$0xff]   ;;  %v1539_v9 = vld [vmem:[%s1870_s3 + $0x4c] ss:$16 sps:$4 sm:$0xff]  }
  0x6f   : > { %v1541_v10 = vld [vmem:[%s1870_s3 + $0x40] ss:$16 sps:$4 sm:$0xff]   ;;  %v1542_v11 = vld [vmem:[%s1870_s3 + $0x48] ss:$16 sps:$4 sm:$0xff]   ;;  %v1543_v12 = vld [vmem:[%s1870_s3 + $0x64] ss:$16 sps:$4 sm:$0xff]  }
  0x70   : > { %766 = vmatpush1.bf16.msra.mxu1 %v1469_v26  ;;  %v1545_v13 = vld [vmem:[%s1870_s3 + $0x6c] ss:$16 sps:$4 sm:$0xff]   ;;  %v1547_v14 = vld [vmem:[%s1870_s3 + $0x60] ss:$16 sps:$4 sm:$0xff]   ;;  %v1548_v15 = vld [vmem:[%s1870_s3 + $0x68] ss:$16 sps:$4 sm:$0xff]  }
  0x71   : > { %879 = vmatpush1.bf16.msra.mxu0 %v1470_v27  ;;  %767 = vmatprep.subr.bf16.mxu1 %v1471_v28  ;;  %v1549_v16 = vld [vmem:[%s1870_s3 + $0x84] ss:$16 sps:$4 sm:$0xff]   ;;  %v1551_v17 = vld [vmem:[%s1870_s3 + $0x8c] ss:$16 sps:$4 sm:$0xff]   ;;  %v1553_v18 = vld [vmem:[%s1870_s3 + $0x80] ss:$16 sps:$4 sm:$0xff]  }
  0x72   : > { %880 = vmatprep.subr.bf16.mxu0 %v1473_v29  ;;  %v1554_v19 = vld [vmem:[%s1870_s3 + $0x88] ss:$16 sps:$4 sm:$0xff]   ;;  %v1555_v20 = vld [vmem:[%s1870_s3 + $0xa4] ss:$16 sps:$4 sm:$0xff]   ;;  %v1557_v21 = vld [vmem:[%s1870_s3 + $0xac] ss:$16 sps:$4 sm:$0xff]  }
  0x73   : > { %v1559_v22 = vld [vmem:[%s1870_s3 + $0xa0] ss:$16 sps:$4 sm:$0xff]   ;;  %v1560_v23 = vld [vmem:[%s1870_s3 + $0xa8] ss:$16 sps:$4 sm:$0xff]   ;;  %v1561_v24 = vld [vmem:[%s1870_s3 + $0xc4] ss:$16 sps:$4 sm:$0xff]  }
  0x74   : > { %768 = vmatpush1.bf16.msra.mxu1 %v1475_v30  ;;  %v1563_v25 = vld [vmem:[%s1870_s3 + $0xcc] ss:$16 sps:$4 sm:$0xff]   ;;  %v1565_v26 = vld [vmem:[%s1870_s3 + $0xc0] ss:$16 sps:$4 sm:$0xff]   ;;  %v1566_v27 = vld [vmem:[%s1870_s3 + $0xc8] ss:$16 sps:$4 sm:$0xff]  }
  0x75   : > { %881 = vmatpush1.bf16.msra.mxu0 %v1476_v31  ;;  %769 = vmatprep.subr.bf16.mxu1 %v1477_v32  ;;  %v1567_v28 = vld [vmem:[%s1870_s3 + $0xe4] ss:$16 sps:$4 sm:$0xff]   ;;  %v1569_v29 = vld [vmem:[%s1870_s3 + $0xec] ss:$16 sps:$4 sm:$0xff]   ;;  %v1571_v30 = vld [vmem:[%s1870_s3 + $0xe0] ss:$16 sps:$4 sm:$0xff]  }
  0x76   : > { %882 = vmatprep.subr.bf16.mxu0 %v1479_v33  ;;  %v1572_v31 = vld [vmem:[%s1870_s3 + $0xe8] ss:$16 sps:$4 sm:$0xff]   ;;  %s1198_s15 = sshll.u32 %s1866_s19, 7  ;;  %s1333_s27 = sshll.u32 %s1748_s13, 11 }
  0x77   : > { %s1913_s17 = scalar_lea.vmem [#allocation7], %s1198_s15  ;;  %s1934_s4 = scalar_lea.hbm %s1984_s2, %s1333_s27 }
  0x78   : > { %770 = vmatpush1.bf16.msra.mxu1 %v1481_v34  ;;  %s1105_s22 = sshll.u32 %s1913_s17, 4  ;;  %s1092_s13 = scalar_lea.sflag [#allocation4], %s1866_s19  ;;  %s1936_s22 = int_to_ptr.vmem [resolvable:$true] %s1105_s22 }
  0x79   : > { %883 = vmatpush1.bf16.msra.mxu0 %v1482_v35  ;;  %771 = vmatprep.subr.bf16.mxu1 %v1483_v36  ;;  %s1631_s5 = scalar_lea.vmem %s1936_s22, 2048  ;;  %s1709_s6 = smov [#allocation7]  }
  0x7a   : > { %884 = vmatprep.subr.bf16.mxu0 %v1485_v37  ;;  %p1632_p4 = scmp.ne.s32.totalorder %s1936_s22, %s1631_s5  ;;  %s1635_s7 = sshll.u32 %s1709_s6, 4  ;;  %s1636_s7 = int_to_ptr.vmem [resolvable:$false] %s1635_s7 }
  0x7b   : > { %s1637_s18 = scalar_lea.vmem %s1636_s7, 4096  ;;  %p1638_p10 = scmp.lt.s32.totalorder %s1936_s22, %s1636_s7 }
  0x7c   : > { %772 = vmatpush1.bf16.msra.mxu1 %v1487_v38  ;;  %p1633_p6 = pnand %p1632_p4, %p1818_p12  ;;  %p1639_p13 = scmp.lt.s32.totalorder %s1637_s18, %s1631_s5 }
  0x7d   : > { %885 = vmatpush1.bf16.msra.mxu0 %v1488_v39  ;;  %773 = vmatprep.subr.bf16.mxu1 %v1489_v40 }
  0x7e   : > { %886 = vmatprep.subr.bf16.mxu0 %v1491_v41  ;;  %p1634_p8 = pneg %p1633_p6  ;;  %p1640_p3 = por %p1639_p13, %p1638_p10 }
  0x80   : > { %774 = vmatpush1.bf16.msra.mxu1 %v1493_v42  ;;  %p1641_p7 = pnand %p1640_p3, %p1634_p8 }
  0x81   : > { %887 = vmatpush1.bf16.msra.mxu0 %v1494_v43  ;;  %775 = vmatprep.subr.bf16.mxu1 %v1495_v44 }
  0x82   : > { %888 = vmatprep.subr.bf16.mxu0 %v1497_v45 }
  0x84   : > { %776 = vmatpush1.bf16.msra.mxu1 %v1499_v46 }
  0x85   : > { %889 = vmatpush1.bf16.msra.mxu0 %v1500_v47  ;;  %777 = vmatprep.subr.bf16.mxu1 %v1501_v48 }
  0x86   : > { %890 = vmatprep.subr.bf16.mxu0 %v1503_v50 }
  0x88   : > { %778 = vmatpush1.bf16.msra.mxu1 %v1505_v52 }
  0x89   : > { %891 = vmatpush1.bf16.msra.mxu0 %v1506_v53  ;;  %779 = vmatprep.subr.bf16.mxu1 %v1507_v54 }
  0x8a   : > { %892 = vmatprep.subr.bf16.mxu0 %v1509_v55 }
  0x8c   : > { %780 = vmatpush1.bf16.msra.mxu1 %v1511_v56 }
  0x8d   : > { %893 = vmatpush1.bf16.msra.mxu0 %v1512_v57  ;;  %781 = vmatprep.subr.bf16.mxu1 %v1513_v58 }
  0x8e   : > { %894 = vmatprep.subr.bf16.mxu0 %v1515_v59 }
  0x90   : > { %782 = vmatpush1.bf16.msra.mxu1 %v1517_v60 }
  0x91   : > { %895 = vmatpush1.bf16.msra.mxu0 %v1518_v61  ;;  %783 = vmatprep.subr.bf16.mxu1 %v1519_v62 }
  0x92   : > { %896 = vmatprep.subr.bf16.mxu0 %v1521_v63 }
  0x94   : > { %784 = vmatpush1.bf16.msra.mxu1 %v1523_v0 }
  0x95   : > { %897 = vmatpush1.bf16.msra.mxu0 %v1524_v1 }
  0x97   : > { %786 = vmatmul.mubr.bf16.vlgmr.msra.gmra.mrb[0].mxu1 %v1525_v2 }
  0x98   : > { %899 = vmatmul.mubr.bf16.vlgmr.msra.gmra.mrb[0].mxu0 %v1528_v3  ;;  %795 = vmatprep.mubr.bf16.mxu1 %v1531_v4 }
  0x99   : > { %908 = vmatprep.mubr.bf16.mxu0 %v1533_v5 }
  0x9f   : > { %796 = vmatmul.mubr.bf16.gmra.mrb[4].mxu1 %v1535_v6 }
  0xa0   : > { %909 = vmatmul.mubr.bf16.gmra.mrb[4].mxu0 %v1536_v7  ;;  %805 = vmatprep.mubr.bf16.mxu1 %v1537_v8 }
  0xa1   : > { %918 = vmatprep.mubr.bf16.mxu0 %v1539_v9 }
  0xa7   : > { %806 = vmatmul.mubr.bf16.gmra.mrb[8].mxu1 %v1541_v10 }
  0xa8   : > { %919 = vmatmul.mubr.bf16.gmra.mrb[8].mxu0 %v1542_v11  ;;  %815 = vmatprep.mubr.bf16.mxu1 %v1543_v12 }
  0xa9   : > { %928 = vmatprep.mubr.bf16.mxu0 %v1545_v13 }
  0xaf   : > { %816 = vmatmul.mubr.bf16.gmra.mrb[12].mxu1 %v1547_v14 }
  0xb0   : > { %929 = vmatmul.mubr.bf16.gmra.mrb[12].mxu0 %v1548_v15  ;;  %825 = vmatprep.mubr.bf16.mxu1 %v1549_v16 }
  0xb1   : > { %938 = vmatprep.mubr.bf16.mxu0 %v1551_v17 }
  0xb7   : > { %826 = vmatmul.mubr.bf16.gmra.mrb[16].mxu1 %v1553_v18 }
  0xb8   : > { %939 = vmatmul.mubr.bf16.gmra.mrb[16].mxu0 %v1554_v19  ;;  %835 = vmatprep.mubr.bf16.mxu1 %v1555_v20 }
  0xb9   : > { %948 = vmatprep.mubr.bf16.mxu0 %v1557_v21 }
  0xbf   : > { %836 = vmatmul.mubr.bf16.gmra.mrb[20].mxu1 %v1559_v22 }
  0xc0   : > { %949 = vmatmul.mubr.bf16.gmra.mrb[20].mxu0 %v1560_v23  ;;  %845 = vmatprep.mubr.bf16.mxu1 %v1561_v24 }
  0xc1   : > { %958 = vmatprep.mubr.bf16.mxu0 %v1563_v25 }
  0xc7   : > { %846 = vmatmul.mubr.bf16.gmra.mrb[24].mxu1 %v1565_v26 }
  0xc8   : > { %959 = vmatmul.mubr.bf16.gmra.mrb[24].mxu0 %v1566_v27  ;;  %855 = vmatprep.mubr.bf16.mxu1 %v1567_v28 }
  0xc9   : > { %968 = vmatprep.mubr.bf16.mxu0 %v1569_v29 }
  0xcf   : > { %856 = vmatmul.mubr.bf16.gmra.mrb[28].mxu1 %v1571_v30 }
  0xd0   : > { %969 = vmatmul.mubr.bf16.gmra.mrb[28].mxu0 %v1572_v31 }
 0x16a   : > { %v787_v32 = vpop.f32.mrb[0].mxu1 }
 0x16b   : > { %v900_v33 = vpop.f32.mrb[0].mxu0  ;;  %v789_v35 = vpop.f32.mrb[1].mxu1 }
 0x16c   : > { %v901_v34 = vadd.f32 %v900_v33, %v787_v32  ;;  %v902_v36 = vpop.f32.mrb[1].mxu0  ;;  %v791_v38 = vpop.f32.mrb[2].mxu1 }
 0x16d   : > { %v903_v37 = vadd.f32 %v902_v36, %v789_v35  ;;  %v904_v39 = vpop.f32.mrb[2].mxu0  ;;  %v793_v41 = vpop.f32.mrb[3].mxu1 }
 0x16e   : > { %v905_v40 = vadd.f32 %v904_v39, %v791_v38  ;;  %v906_v42 = vpop.f32.mrb[3].mxu0 }
 0x16f   : > { %v1317_v43 = vpack.c.bf16 %v903_v37, %v901_v34  ;;  %v907_v44 = vadd.f32 %v906_v42, %v793_v41 }
 0x171   : > { %1075 = vst [vmem:[%s1913_s17] sm:$0xff] %v1317_v43  ;;  %v1318_v45 = vpack.c.bf16 %v907_v44, %v905_v40 }
 0x172   : > { %v797_v46 = vpop.f32.mrb[4].mxu1 }
 0x173   : > { %1076 = vst [vmem:[%s1913_s17 + $0x8] sm:$0xff] %v1318_v45  ;;  %v910_v47 = vpop.f32.mrb[4].mxu0  ;;  %v799_v49 = vpop.f32.mrb[5].mxu1 }
 0x174   : > { %v911_v48 = vadd.f32 %v910_v47, %v797_v46  ;;  %v912_v50 = vpop.f32.mrb[5].mxu0  ;;  %v801_v52 = vpop.f32.mrb[6].mxu1 }
 0x175   : > { %v913_v51 = vadd.f32 %v912_v50, %v799_v49  ;;  %v914_v53 = vpop.f32.mrb[6].mxu0  ;;  %v803_v55 = vpop.f32.mrb[7].mxu1 }
 0x176   : > { %v915_v54 = vadd.f32 %v914_v53, %v801_v52  ;;  %v916_v56 = vpop.f32.mrb[7].mxu0 }
 0x177   : > { %v1319_v57 = vpack.c.bf16 %v913_v51, %v911_v48  ;;  %v917_v58 = vadd.f32 %v916_v56, %v803_v55 }
 0x179   : > { %1077 = vst [vmem:[%s1913_s17 + $0x10] sm:$0xff] %v1319_v57  ;;  %v1320_v59 = vpack.c.bf16 %v917_v58, %v915_v54 }
 0x17a   : > { %v807_v60 = vpop.f32.mrb[8].mxu1 }
 0x17b   : > { %1078 = vst [vmem:[%s1913_s17 + $0x18] sm:$0xff] %v1320_v59  ;;  %v920_v61 = vpop.f32.mrb[8].mxu0  ;;  %v809_v63 = vpop.f32.mrb[9].mxu1 }
 0x17c   : > { %v921_v62 = vadd.f32 %v920_v61, %v807_v60  ;;  %v922_v0 = vpop.f32.mrb[9].mxu0  ;;  %v811_v2 = vpop.f32.mrb[10].mxu1 }
 0x17d   : > { %v923_v1 = vadd.f32 %v922_v0, %v809_v63  ;;  %v924_v3 = vpop.f32.mrb[10].mxu0  ;;  %v813_v5 = vpop.f32.mrb[11].mxu1 }
 0x17e   : > { %v925_v4 = vadd.f32 %v924_v3, %v811_v2  ;;  %v926_v6 = vpop.f32.mrb[11].mxu0 }
 0x17f   : > { %v1321_v7 = vpack.c.bf16 %v923_v1, %v921_v62  ;;  %v927_v8 = vadd.f32 %v926_v6, %v813_v5 }
 0x181   : > { %1079 = vst [vmem:[%s1913_s17 + $0x20] sm:$0xff] %v1321_v7  ;;  %v1322_v9 = vpack.c.bf16 %v927_v8, %v925_v4 }
 0x182   : > { %v817_v10 = vpop.f32.mrb[12].mxu1 }
 0x183   : > { %1080 = vst [vmem:[%s1913_s17 + $0x28] sm:$0xff] %v1322_v9  ;;  %v930_v11 = vpop.f32.mrb[12].mxu0  ;;  %v819_v13 = vpop.f32.mrb[13].mxu1 }
 0x184   : > { %v931_v12 = vadd.f32 %v930_v11, %v817_v10  ;;  %v932_v14 = vpop.f32.mrb[13].mxu0  ;;  %v821_v16 = vpop.f32.mrb[14].mxu1 }
 0x185   : > { %v933_v15 = vadd.f32 %v932_v14, %v819_v13  ;;  %v934_v17 = vpop.f32.mrb[14].mxu0  ;;  %v823_v19 = vpop.f32.mrb[15].mxu1 }
 0x186   : > { %v935_v18 = vadd.f32 %v934_v17, %v821_v16  ;;  %v936_v20 = vpop.f32.mrb[15].mxu0 }
 0x187   : > { %v1323_v21 = vpack.c.bf16 %v933_v15, %v931_v12  ;;  %v937_v22 = vadd.f32 %v936_v20, %v823_v19 }
 0x189   : > { %1081 = vst [vmem:[%s1913_s17 + $0x30] sm:$0xff] %v1323_v21  ;;  %v1324_v23 = vpack.c.bf16 %v937_v22, %v935_v18 }
 0x18a   : > { %v827_v24 = vpop.f32.mrb[16].mxu1 }
 0x18b   : > { %1082 = vst [vmem:[%s1913_s17 + $0x38] sm:$0xff] %v1324_v23  ;;  %v940_v25 = vpop.f32.mrb[16].mxu0  ;;  %v829_v27 = vpop.f32.mrb[17].mxu1 }
 0x18c   : > { %v941_v26 = vadd.f32 %v940_v25, %v827_v24  ;;  %v942_v28 = vpop.f32.mrb[17].mxu0  ;;  %v831_v30 = vpop.f32.mrb[18].mxu1 }
 0x18d   : > { %v943_v29 = vadd.f32 %v942_v28, %v829_v27  ;;  %v944_v31 = vpop.f32.mrb[18].mxu0  ;;  %v833_v33 = vpop.f32.mrb[19].mxu1 }
 0x18e   : > { %v945_v32 = vadd.f32 %v944_v31, %v831_v30  ;;  %v946_v34 = vpop.f32.mrb[19].mxu0 }
 0x18f   : > { %v1325_v35 = vpack.c.bf16 %v943_v29, %v941_v26  ;;  %v947_v36 = vadd.f32 %v946_v34, %v833_v33 }
 0x191   : > { %1083 = vst [vmem:[%s1913_s17 + $0x40] sm:$0xff] %v1325_v35  ;;  %v1326_v37 = vpack.c.bf16 %v947_v36, %v945_v32 }
 0x192   : > { %v837_v38 = vpop.f32.mrb[20].mxu1 }
 0x193   : > { %1084 = vst [vmem:[%s1913_s17 + $0x48] sm:$0xff] %v1326_v37  ;;  %v950_v39 = vpop.f32.mrb[20].mxu0  ;;  %v839_v41 = vpop.f32.mrb[21].mxu1 }
 0x194   : > { %v951_v40 = vadd.f32 %v950_v39, %v837_v38  ;;  %v952_v42 = vpop.f32.mrb[21].mxu0  ;;  %v841_v44 = vpop.f32.mrb[22].mxu1 }
 0x195   : > { %v953_v43 = vadd.f32 %v952_v42, %v839_v41  ;;  %v954_v45 = vpop.f32.mrb[22].mxu0  ;;  %v843_v47 = vpop.f32.mrb[23].mxu1 }
 0x196   : > { %v955_v46 = vadd.f32 %v954_v45, %v841_v44  ;;  %v956_v48 = vpop.f32.mrb[23].mxu0 }
 0x197   : > { %v1327_v49 = vpack.c.bf16 %v953_v43, %v951_v40  ;;  %v957_v50 = vadd.f32 %v956_v48, %v843_v47 }
 0x199   : > { %1085 = vst [vmem:[%s1913_s17 + $0x50] sm:$0xff] %v1327_v49  ;;  %v1328_v51 = vpack.c.bf16 %v957_v50, %v955_v46 }
 0x19a   : > { %v847_v52 = vpop.f32.mrb[24].mxu1 }
 0x19b   : > { %1086 = vst [vmem:[%s1913_s17 + $0x58] sm:$0xff] %v1328_v51  ;;  %v960_v53 = vpop.f32.mrb[24].mxu0  ;;  %v849_v55 = vpop.f32.mrb[25].mxu1 }
 0x19c   : > { %v961_v54 = vadd.f32 %v960_v53, %v847_v52  ;;  %v962_v56 = vpop.f32.mrb[25].mxu0  ;;  %v851_v58 = vpop.f32.mrb[26].mxu1 }
 0x19d   : > { %v963_v57 = vadd.f32 %v962_v56, %v849_v55  ;;  %v964_v59 = vpop.f32.mrb[26].mxu0  ;;  %v853_v61 = vpop.f32.mrb[27].mxu1 }
 0x19e   : > { %v965_v60 = vadd.f32 %v964_v59, %v851_v58  ;;  %v966_v62 = vpop.f32.mrb[27].mxu0 }
 0x19f   : > { %v1329_v63 = vpack.c.bf16 %v963_v57, %v961_v54  ;;  %v967_v0 = vadd.f32 %v966_v62, %v853_v61 }
 0x1a1   : > { %1087 = vst [vmem:[%s1913_s17 + $0x60] sm:$0xff] %v1329_v63  ;;  %v1330_v1 = vpack.c.bf16 %v967_v0, %v965_v60 }
 0x1a2   : > { %v857_v2 = vpop.f32.mrb[28].mxu1 }
 0x1a3   : > { %1088 = vst [vmem:[%s1913_s17 + $0x68] sm:$0xff] %v1330_v1  ;;  %v970_v3 = vpop.f32.mrb[28].mxu0  ;;  %v859_v5 = vpop.f32.mrb[29].mxu1 }
 0x1a4   : > { %v971_v4 = vadd.f32 %v970_v3, %v857_v2  ;;  %v972_v6 = vpop.f32.mrb[29].mxu0  ;;  %v861_v8 = vpop.f32.mrb[30].mxu1 }
 0x1a5   : > { %v973_v7 = vadd.f32 %v972_v6, %v859_v5  ;;  %v974_v9 = vpop.f32.mrb[30].mxu0  ;;  %v863_v11 = vpop.f32.mrb[31].mxu1 }
 0x1a6   : > { %v975_v10 = vadd.f32 %v974_v9, %v861_v8  ;;  %v976_v12 = vpop.f32.mrb[31].mxu0 }
 0x1a7   : > { %v1331_v13 = vpack.c.bf16 %v973_v7, %v971_v4  ;;  %v977_v14 = vadd.f32 %v976_v12, %v863_v11 }
 0x1a9   : > { %1089 = vst [vmem:[%s1913_s17 + $0x70] sm:$0xff] %v1331_v13  ;;  %v1332_v15 = vpack.c.bf16 %v977_v14, %v975_v10 }
 0x1ab   : > { %1090 = vst [vmem:[%s1913_s17 + $0x78] sm:$0xff] %v1332_v15 }
 0x1ac   : > { %1644 = shalt.err (!%p1641_p7)
}
 0x1ad   : > { %s1645_s24 = scalar_lea.hbm %s1934_s4, 2048  ;;  %s1649_s26 = scalar_lea.hbm %s1984_s2, 4096 }
 0x1ae   : > { %p1646_p9 = scmp.ne.s32.totalorder %s1934_s4, %s1645_s24  ;;  %p1650_p5 = scmp.lt.u32.totalorder %s1934_s4, %s1984_s2 }
 0x1af   : > { %p1651_p11 = scmp.lt.u32.totalorder %s1649_s26, %s1645_s24  ;;  %p1653_p4 = scmp.lt.u32.totalorder %s1645_s24, %s1934_s4 }
 0x1b0   : > { %p1647_p2 = pnand %p1646_p9, %p1818_p12 }
 0x1b1   : > { %p1652_p1 = por %p1651_p11, %p1650_p5 }
 0x1b2   : > { %p1648_p0 = pneg %p1647_p2 }
 0x1b3   : > { %p1654_p6 = por %p1653_p4, %p1652_p1 }
 0x1b5   : > { %p1655_p8 = pnand %p1654_p6, %p1648_p0 }
 0x1b7   : > { %1658 = shalt.err (!%p1655_p8)
}
 0x1b8   : > { %s1710_s3 = smov 128   ;;  %s1711_s15 = smov 8  }
 0x1b9   : > { %1372 = dma.vmem_to_hbm [thread:$0]  (%p1818_p12), %s1936_s22, 2048, %s1934_s4, %s1092_s13, %s1710_s3, %s1710_s3, %s1711_s15  }
 0x1ba PF: > { %s1120_s17 = sand.u32 1, %s1689_s9   ;;  %p1999_p10 = scmp.ne.s32.totalorder %s1989_s16, 0 }
 0x1bb   : > { %p2000_p13 = scmp.ge.s32.totalorder %s1701_s12, 2  ;;  %s1121_s27 = scalar_lea.sflag [#allocation4], %s1120_s17 }
 0x1bd   : > { %p1383_p3 = pnand %p2000_p13, %p1999_p10 }
 0x1bf   : > { %1684 = dma.done.wait (!%p1383_p3), %s1121_s27, 2048  }
 0x1c0   : > { %1686 = vsyncadd (!%p1383_p3), %s1121_s27, 4294965248  ;;  %p16_p7 = scmp.ge.s32.totalorder %s1783_s21, 4   ;;  %s2001_s9 = smov %s1693_s10 }
 0x1c1   : > { %s2002_s10 = smov %s1697_s11  ;;  %s2003_s11 = smov %s1814_s8 }
 0x1c2   : > { %s2004_s12 = smov %s1783_s21  ;;  %18 = sbr.rel (!%p16_p7) target bundleno = 6 (0x6), region = 77 }
 0x1c9   :  { %1126 = vsyncpa [#allocation3], 1 }
 0x1ca   :  { %1128 = vsyncpa [#allocation3 + $0x1], 1 }
 0x1cb   :  { %1129 = vsyncpa [#allocation6], 1 }
 0x1cc   :  { %1130 = vsyncpa [#allocation4], 1 }
 0x1cd   :  { %1132 = vsyncpa [#allocation4 + $0x1], 1 }

</bundles_post_ra>
